<compile_context>
chip_gen: v5e
topology: v5e:2x2
jax: 0.10.0
libtpu: 0.0.40
codegen_flags: <defaults>
</compile_context>

<pallas_src>
import jax
import jax.numpy as jnp
from jax.experimental import pallas as pl
from jax.experimental.pallas import tpu as pltpu


def _round_up(n, m):
    return ((n + m - 1) // m) * m


def _mlp_kernel(x_ref, w1_ref, b1_ref, w2_ref, b2_ref, w3_ref, b3_ref, o_ref):
    # Layer 1: f32 MXU matmul, bias + ReLU on the VPU.
    h = jnp.dot(x_ref[...], w1_ref[...], preferred_element_type=jnp.float32)
    h = jnp.maximum(h + b1_ref[...], 0.0)
    # Layer 2.
    h = jnp.dot(h, w2_ref[...], preferred_element_type=jnp.float32)
    h = jnp.maximum(h + b2_ref[...], 0.0)
    # Layer 3: Linear, no activation.
    out = jnp.dot(h, w3_ref[...], preferred_element_type=jnp.float32)
    o_ref[...] = (out + b3_ref[...]).astype(o_ref.dtype)


def init_params(key, in_dim, n_hidden_1, n_hidden_2, out_dim):
    """nn.Linear default init U(-1/sqrt(fan_in), 1/sqrt(fan_in)).
    Weights stored pre-transposed as (fan_in, fan_out); biases as (1, fan_out)."""
    def linear(k, fan_in, fan_out):
        kw, kb = jax.random.split(k)
        bound = 1.0 / jnp.sqrt(fan_in)
        w = jax.random.uniform(kw, (fan_in, fan_out), jnp.float32, -bound, bound)
        b = jax.random.uniform(kb, (1, fan_out), jnp.float32, -bound, bound)
        return w, b

    k1, k2, k3 = jax.random.split(key, 3)
    w1, b1 = linear(k1, in_dim, n_hidden_1)
    w2, b2 = linear(k2, n_hidden_1, n_hidden_2)
    w3, b3 = linear(k3, n_hidden_2, out_dim)
    return {"w1": w1, "b1": b1, "w2": w2, "b2": b2, "w3": w3, "b3": b3}


def activation_net_forward(x, params, *, tm_max=2048):
    """x: (B, in_dim) f32; params: output of init_params()."""
    w1, b1 = params["w1"], params["b1"]
    w2, b2 = params["w2"], params["b2"]
    w3, b3 = params["w3"], params["b3"]

    B, in_dim = x.shape
    out_dim = w3.shape[1]

    # Batch tiling: pad only to a multiple of 16 rows (sublane packing), pick a
    # tile count so padding waste stays small, and use >=2 tiles whenever the
    # batch allows it so a v7x megacore can shard the "parallel" batch axis.
    b_pad = _round_up(B, 16)
    n_tiles = max(pl.cdiv(b_pad, tm_max), 2 if b_pad >= 32 else 1)
    tm = _round_up(pl.cdiv(b_pad, n_tiles), 16)
    bp = n_tiles * tm

    x_p = x if bp == B else jnp.pad(x, ((0, bp - B), (0, 0)))

    flops = 2 * bp * (w1.shape[0] * w1.shape[1]
                      + w2.shape[0] * w2.shape[1]
                      + w3.shape[0] * w3.shape[1])
    bytes_accessed = 4 * (x_p.size
                          + w1.size + w2.size + w3.size
                          + b1.size + b2.size + b3.size
                          + bp * out_dim)

    out_p = pl.pallas_call(
        _mlp_kernel,
        out_shape=jax.ShapeDtypeStruct((bp, out_dim), jnp.float32),
        grid=(n_tiles,),
        in_specs=[
            pl.BlockSpec((tm, in_dim), lambda i: (i, 0)),   # x: tiled over batch
            pl.BlockSpec(w1.shape, lambda i: (0, 0)),        # weights / biases:
            pl.BlockSpec(b1.shape, lambda i: (0, 0)),        # same block every step
            pl.BlockSpec(w2.shape, lambda i: (0, 0)),        # -> loaded once, stay
            pl.BlockSpec(b2.shape, lambda i: (0, 0)),        #    VMEM-resident
            pl.BlockSpec(w3.shape, lambda i: (0, 0)),
            pl.BlockSpec(b3.shape, lambda i: (0, 0)),
        ],
        out_specs=pl.BlockSpec((tm, out_dim), lambda i: (i, 0)),
        compiler_params=pltpu.CompilerParams(
            dimension_semantics=("parallel",)),              # megacore over batch tiles
        cost_estimate=pl.CostEstimate(flops=flops, transcendentals=0,
                                      bytes_accessed=bytes_accessed),
    )(x_p, w1, b1, w2, b2, w3, b3)

    # Padded batch rows hold ReLU(bias) garbage — always slice them away.
    return out_p if bp == B else out_p[:B]


if __name__ == "__main__":
    key = jax.random.PRNGKey(0)
    k_x, k_p = jax.random.split(key)

    batch, in_dim, n_hidden_1, n_hidden_2, out_dim = 8, 32, 64, 64, 16
    x = jax.random.normal(k_x, (batch, in_dim), jnp.float32)

    params = init_params(k_p, in_dim, n_hidden_1, n_hidden_2, out_dim)

    out = activation_net_forward(x, params)
    jax.block_until_ready(out)
    assert out.shape == (batch, out_dim)

    # Reference check in plain f32 JAX.
    h = jnp.maximum(x @ params["w1"] + params["b1"], 0.0)
    h = jnp.maximum(h @ params["w2"] + params["b2"], 0.0)
    ref = h @ params["w3"] + params["b3"]
    assert jnp.allclose(out, ref, atol=2e-2, rtol=2e-2), (
        f"mismatch vs reference, max abs diff {jnp.max(jnp.abs(out - ref))}")

    print("KERNEL_OK")
</pallas_src>

<mosaic_0001>
module attributes {stable_mosaic.version = 11 : i64} {
  func.func @_mlp_kernel(%arg0: i32, %arg1: memref<16x32xf32, #tpu.memory_space<vmem>>, %arg2: memref<32x64xf32, #tpu.memory_space<vmem>>, %arg3: memref<1x64xf32, #tpu.memory_space<vmem>>, %arg4: memref<64x64xf32, #tpu.memory_space<vmem>>, %arg5: memref<1x64xf32, #tpu.memory_space<vmem>>, %arg6: memref<64x16xf32, #tpu.memory_space<vmem>>, %arg7: memref<1x16xf32, #tpu.memory_space<vmem>>, %arg8: memref<16x16xf32, #tpu.memory_space<vmem>>) attributes {dimension_semantics = [#tpu.dimension_semantics<parallel>], iteration_bounds = array<i64: 1>, scalar_prefetch = 0 : i64, scratch_operands = 0 : i64, tpu.core_type = #tpu.core_type<tc>, window_params = [{transform_indices = @transform_0, window_bounds = array<i64: 16, 32>}, {pipeline_mode = #tpu.pipeline_mode<synchronous>, transform_indices = @transform_1, window_bounds = array<i64: 32, 64>}, {pipeline_mode = #tpu.pipeline_mode<synchronous>, transform_indices = @transform_2, window_bounds = array<i64: 1, 64>}, {pipeline_mode = #tpu.pipeline_mode<synchronous>, transform_indices = @transform_3, window_bounds = array<i64: 64, 64>}, {pipeline_mode = #tpu.pipeline_mode<synchronous>, transform_indices = @transform_4, window_bounds = array<i64: 1, 64>}, {pipeline_mode = #tpu.pipeline_mode<synchronous>, transform_indices = @transform_5, window_bounds = array<i64: 64, 16>}, {pipeline_mode = #tpu.pipeline_mode<synchronous>, transform_indices = @transform_6, window_bounds = array<i64: 1, 16>}, {transform_indices = @transform_7, window_bounds = array<i64: 16, 16>}]} {
    %c0 = arith.constant 0 : index
    %c0_0 = arith.constant 0 : index
    %0 = vector.load %arg1[%c0, %c0_0] : memref<16x32xf32, #tpu.memory_space<vmem>>, vector<16x32xf32>
    %c0_1 = arith.constant 0 : index
    %c0_2 = arith.constant 0 : index
    %1 = vector.load %arg2[%c0_1, %c0_2] : memref<32x64xf32, #tpu.memory_space<vmem>>, vector<32x64xf32>
    %cst = arith.constant dense<0.000000e+00> : vector<16x64xf32>
    %2 = tpu.matmul %0, %1, %cst {dimension_numbers = #tpu.dot_dimension_numbers<[1], [0], [0], [1], [0, 0, 1, 1], [], []>} : vector<16x32xf32>, vector<32x64xf32>, vector<16x64xf32> -> vector<16x64xf32>
    %c0_3 = arith.constant 0 : index
    %c0_4 = arith.constant 0 : index
    %3 = vector.load %arg3[%c0_3, %c0_4] : memref<1x64xf32, #tpu.memory_space<vmem>>, vector<1x64xf32>
    %4 = vector.broadcast %3 : vector<1x64xf32> to vector<16x64xf32>
    %5 = arith.addf %2, %4 : vector<16x64xf32>
    %cst_5 = arith.constant 0.000000e+00 : f32
    %6 = vector.broadcast %cst_5 : f32 to vector<16x64xf32>
    %7 = arith.maximumf %5, %6 : vector<16x64xf32>
    %c0_6 = arith.constant 0 : index
    %c0_7 = arith.constant 0 : index
    %8 = vector.load %arg4[%c0_6, %c0_7] : memref<64x64xf32, #tpu.memory_space<vmem>>, vector<64x64xf32>
    %cst_8 = arith.constant dense<0.000000e+00> : vector<16x64xf32>
    %9 = tpu.matmul %7, %8, %cst_8 {dimension_numbers = #tpu.dot_dimension_numbers<[1], [0], [0], [1], [0, 0, 1, 1], [], []>} : vector<16x64xf32>, vector<64x64xf32>, vector<16x64xf32> -> vector<16x64xf32>
    %c0_9 = arith.constant 0 : index
    %c0_10 = arith.constant 0 : index
    %10 = vector.load %arg5[%c0_9, %c0_10] : memref<1x64xf32, #tpu.memory_space<vmem>>, vector<1x64xf32>
    %11 = vector.broadcast %10 : vector<1x64xf32> to vector<16x64xf32>
    %12 = arith.addf %9, %11 : vector<16x64xf32>
    %cst_11 = arith.constant 0.000000e+00 : f32
    %13 = vector.broadcast %cst_11 : f32 to vector<16x64xf32>
    %14 = arith.maximumf %12, %13 : vector<16x64xf32>
    %c0_12 = arith.constant 0 : index
    %c0_13 = arith.constant 0 : index
    %15 = vector.load %arg6[%c0_12, %c0_13] : memref<64x16xf32, #tpu.memory_space<vmem>>, vector<64x16xf32>
    %cst_14 = arith.constant dense<0.000000e+00> : vector<16x16xf32>
    %16 = tpu.matmul %14, %15, %cst_14 {dimension_numbers = #tpu.dot_dimension_numbers<[1], [0], [0], [1], [0, 0, 1, 1], [], []>} : vector<16x64xf32>, vector<64x16xf32>, vector<16x16xf32> -> vector<16x16xf32>
    %c0_15 = arith.constant 0 : index
    %c0_16 = arith.constant 0 : index
    %17 = vector.load %arg7[%c0_15, %c0_16] : memref<1x16xf32, #tpu.memory_space<vmem>>, vector<1x16xf32>
    %18 = vector.broadcast %17 : vector<1x16xf32> to vector<16x16xf32>
    %19 = arith.addf %16, %18 : vector<16x16xf32>
    %c0_17 = arith.constant 0 : index
    %c0_18 = arith.constant 0 : index
    %20 = vector.load %arg8[%c0_17, %c0_18] : memref<16x16xf32, #tpu.memory_space<vmem>>, vector<16x16xf32>
    tpu.vector_store %arg8[%c0_17, %c0_18], %19 {strides = array<i32>} : memref<16x16xf32, #tpu.memory_space<vmem>>, vector<16x16xf32>,
    return
  }
  func.func @transform_0(%arg0: i32) -> (i32, i32) {
    %c0_i32 = arith.constant 0 : i32
    %c0_i32_0 = arith.constant 0 : i32
    return %arg0, %c0_i32 : i32, i32
  }
  func.func @transform_1(%arg0: i32) -> (i32, i32) {
    %c0_i32 = arith.constant 0 : i32
    %c0_i32_0 = arith.constant 0 : i32
    %c0_i32_1 = arith.constant 0 : i32
    return %c0_i32, %c0_i32_0 : i32, i32
  }
  func.func @transform_2(%arg0: i32) -> (i32, i32) {
    %c0_i32 = arith.constant 0 : i32
    %c0_i32_0 = arith.constant 0 : i32
    %c0_i32_1 = arith.constant 0 : i32
    return %c0_i32, %c0_i32_0 : i32, i32
  }
  func.func @transform_3(%arg0: i32) -> (i32, i32) {
    %c0_i32 = arith.constant 0 : i32
    %c0_i32_0 = arith.constant 0 : i32
    %c0_i32_1 = arith.constant 0 : i32
    return %c0_i32, %c0_i32_0 : i32, i32
  }
  func.func @transform_4(%arg0: i32) -> (i32, i32) {
    %c0_i32 = arith.constant 0 : i32
    %c0_i32_0 = arith.constant 0 : i32
    %c0_i32_1 = arith.constant 0 : i32
    return %c0_i32, %c0_i32_0 : i32, i32
  }
  func.func @transform_5(%arg0: i32) -> (i32, i32) {
    %c0_i32 = arith.constant 0 : i32
    %c0_i32_0 = arith.constant 0 : i32
    %c0_i32_1 = arith.constant 0 : i32
    return %c0_i32, %c0_i32_0 : i32, i32
  }
  func.func @transform_6(%arg0: i32) -> (i32, i32) {
    %c0_i32 = arith.constant 0 : i32
    %c0_i32_0 = arith.constant 0 : i32
    %c0_i32_1 = arith.constant 0 : i32
    return %c0_i32, %c0_i32_0 : i32, i32
  }
  func.func @transform_7(%arg0: i32) -> (i32, i32) {
    %c0_i32 = arith.constant 0 : i32
    %c0_i32_0 = arith.constant 0 : i32
    return %arg0, %c0_i32 : i32, i32
  }
}

</mosaic_0001>

<bundles_post_ra>
// kernel: tpu_custom_call.1
= control target key start
LH: loop header
LB: loop body
LE: loop exit
PB: predicated region body
PF: predicated region fallthrough
CT: control target
= control target key end

     0   :  { %12 = vsyncpa [#allocation3], 0  ;;  %s388_s0 = inlined_call_operand.vmem [shape: f32[16,32], index: 0, kind: input, shape index: {}]   ;;  %s389_s1 = inlined_call_operand.hbm [shape: f32[32,64], index: 1, kind: input, shape index: {}]   ;;  %s390_s2 = inlined_call_operand.vmem [shape: f32[1,64], index: 2, kind: input, shape index: {}]   ;;  %s391_s3 = inlined_call_operand.vmem [shape: f32[64,64], index: 3, kind: input, shape index: {}]   ;;  %s392_s4 = inlined_call_operand.vmem [shape: f32[1,64], index: 4, kind: input, shape index: {}]   ;;  %s393_s5 = inlined_call_operand.vmem [shape: f32[64,16], index: 5, kind: input, shape index: {}]   ;;  %s394_s6 = inlined_call_operand.vmem [shape: f32[1,16], index: 6, kind: input, shape index: {}]   ;;  %s395_s7 = inlined_call_operand.hbm [shape: f32[16,16], index: 7, kind: output, shape index: {}]  }
   0x1   :  { %13 = vsyncpa [#allocation4], 0  ;;  %s20_s26 = sshll.u32 %s389_s1, 4  ;;  %s265_s27 = smov [#allocation2]   ;;  %s21_s26 = int_to_ptr.hbm [resolvable:$true] %s20_s26 }
   0x2   :  { %s22_s28 = sshll.u32 %s265_s27, 4  ;;  %s266_s29 = smov 128   ;;  %s23_s28 = int_to_ptr.vmem [resolvable:$true] %s22_s28 }
   0x3   :  { %s267_s30 = smov 8  }
   0x4   :  { %28 = dma.hbm_to_vmem [thread:$0]  %s21_s26, 512, %s23_s28, [#allocation3], %s266_s29, %s266_s29, %s267_s30  }
   0x5   :  { %261 = dma.done.wait [#allocation3], 512  }
   0x6   :  { %262 = vsyncadd [#allocation3], 4294966784  ;;  %v48_v0 = vld [vmem:[#allocation2 + $0x18] sm:$0xff]  ;;  %v47_v1 = vld [vmem:[#allocation2 + $0x10] sm:$0xff]  ;;  %vm53_vm0 = vcmask 261120   ;;  %vm97_vm1 = vcmask 523264  }
   0x7   :  { %72 = vmatpush.msra.mxu0 %v48_v0  ;;  %v46_v2 = vld [vmem:[#allocation2 + $0x8] sm:$0xff]  ;;  %v92_v3 = vld [vmem:[%s391_s3 + $0x38] sm:$0xff]  ;;  %v91_v4 = vld [vmem:[%s391_s3 + $0x30] sm:$0xff]  ;;  %vm170_vm2 = vcmask 130048   ;;  %s179_s26 = sshll.u32 %s395_s7, 4  ;;  %s180_s26 = int_to_ptr.hbm [resolvable:$true] %s179_s26 }
   0x8   :  { %v45_v5 = vld [vmem:[#allocation2] sm:$0xff]  ;;  %112 = vmatpush.msra.mxu1 %v92_v3  ;;  %v90_v6 = vld [vmem:[%s391_s3 + $0x28] sm:$0xff]  ;;  %198 = vmatpush.msra.mxu3 %v92_v3  ;;  %v88_v9 = vld [vmem:[%s391_s3 + $0x18] sm:$0xff] }
   0x9   :  { %73 = vmatpush.msra.mxu0 %v47_v1  ;;  %v43_v7 = vld [vmem:[%s388_s0] sm:$0xff]  ;;  %v44_v10 = vld [vmem:[%s388_s0 + $0x8] sm:$0xff]  ;;  %v87_v11 = vld [vmem:[%s391_s3 + $0x10] sm:$0xff] }
   0xa   :  { %113 = vmatpush.msra.mxu1 %v91_v4  ;;  %v89_v8 = vld [vmem:[%s391_s3 + $0x20] sm:$0xff]  ;;  %199 = vmatpush.msra.mxu3 %v91_v4  ;;  %v86_v12 = vld [vmem:[%s391_s3 + $0x8] sm:$0xff]  ;;  %v136_v14 = vld [vmem:[%s393_s5 + $0x38] sm:$0xff] }
   0xb   :  { %74 = vmatpush.msra.mxu0 %v46_v2  ;;  %v85_v13 = vld [vmem:[%s391_s3] sm:$0xff]  ;;  %v135_v15 = vld [vmem:[%s393_s5 + $0x30] sm:$0xff]  ;;  %155 = vmatpush.msra.mxu2 %v136_v14  ;;  %v134_v16 = vld [vmem:[%s393_s5 + $0x28] sm:$0xff] }
   0xc   :  { %114 = vmatpush.msra.mxu1 %v90_v6  ;;  %200 = vmatpush.msra.mxu3 %v90_v6  ;;  %v133_v17 = vld [vmem:[%s393_s5 + $0x20] sm:$0xff]  ;;  %v132_v18 = vld [vmem:[%s393_s5 + $0x18] sm:$0xff]  ;;  %v131_v26 = vld [vmem:[%s393_s5 + $0x10] sm:$0xff] }
   0xd   :  { %75 = vmatpush.msra.mxu0 %v45_v5  ;;  %156 = vmatpush.msra.mxu2 %v135_v15  ;;  %v210_v19 = vld [vmem:[%s390_s2] ss:$0 sm:$0xff]  ;;  %v130_v27 = vld [vmem:[%s393_s5 + $0x8] sm:$0xff] }
   0xe   :  { %192 = vmatmul.msk.f32.vlgmr.msra.gmra.mxu0 %vm53_vm0, %v43_v7  ;;  %115 = vmatpush.msra.mxu1 %v89_v8  ;;  %v129_v28 = vld [vmem:[%s393_s5] sm:$0xff]  ;;  %s268_s5 = smov [#allocation5]  }
   0xf   :  { %201 = vmatpush.msra.mxu3 %v89_v8  ;;  %157 = vmatpush.msra.mxu2 %v134_v16  ;;  %v211_v29 = vld [vmem:[%s392_s4] ss:$0 sm:$0xff]  ;;  %s177_s4 = sshll.u32 %s268_s5, 4  ;;  %s178_s4 = int_to_ptr.vmem [resolvable:$true] %s177_s4 }
  0x10   :  { %116 = vmatpush.msra.mxu1 %v88_v9  ;;  %v212_v36 = vld [vmem:[%s394_s6] ss:$0 sm:$0xff] }
  0x11   :  { %202 = vmatpush.msra.mxu3 %v88_v9  ;;  %158 = vmatpush.msra.mxu2 %v133_v17 }
  0x12   :  { %117 = vmatpush.msra.mxu1 %v87_v11 }
  0x13   :  { %203 = vmatpush.msra.mxu3 %v87_v11  ;;  %159 = vmatpush.msra.mxu2 %v132_v18 }
  0x14   :  { %118 = vmatpush.msra.mxu1 %v86_v12 }
  0x15   :  { %204 = vmatpush.msra.mxu3 %v86_v12  ;;  %160 = vmatpush.msra.mxu2 %v131_v26 }
  0x16   :  { %193 = vmatmul.msk.f32.gmra.mxu0 %vm53_vm0, %v44_v10  ;;  %119 = vmatpush.msra.mxu1 %v85_v13 }
  0x17   :  { %205 = vmatpush.msra.mxu3 %v85_v13  ;;  %161 = vmatpush.msra.mxu2 %v130_v27 }
  0x19   :  { %162 = vmatpush.msra.mxu2 %v129_v28 }
  0x8b   :  { %v77_v20 = vpop.f32.mrf.mxu0 }
  0x8c   :  { %v78_v21 = vadd.f32 %v210_v19, %v77_v20 }
  0x8e   :  { %v83_v22 = vmax.f32 %v78_v21, 0.0 }
  0x90   :  { %194 = vmatmul.msk.f32.vlgmr.msra.gmra.mxu1 %vm97_vm1, %v83_v22 }
  0x93   :  { %v80_v23 = vpop.f32.mrf.mxu0 }
  0x94   :  { %v81_v24 = vadd.f32 %v210_v19, %v80_v23 }
  0x96   :  { %v84_v25 = vmax.f32 %v81_v24, 0.0 }
  0x98   :  { %195 = vmatmul.msk.f32.vlgmr.msra.gmra.mxu3 %vm97_vm1, %v84_v25 }
 0x10d   :  { %v121_v30 = vpop.f32.mrf.mxu1 }
 0x10e   :  { %v122_v31 = vadd.f32 %v211_v29, %v121_v30 }
 0x110   :  { %v127_v32 = vmax.f32 %v122_v31, 0.0 }
 0x112   :  { %196 = vmatmul.msk.f32.vlgmr.msra.gmra.mxu2 %vm97_vm1, %v127_v32 }
 0x11b   :  { %v124_v33 = vpop.f32.mrf.mxu3 }
 0x11c   :  { %v125_v34 = vadd.f32 %v211_v29, %v124_v33 }
 0x11e   :  { %v128_v35 = vmax.f32 %v125_v34, 0.0 }
 0x120   :  { %197 = vmatmul.msk.f32.gmra.mxu2 %vm97_vm1, %v128_v35 }
 0x195   :  { %v164_v37 = vpop.f32.mrf.mxu2 }
 0x196   :  { %v165_v38 = vadd.f32 %v212_v36, %v164_v37 }
 0x198   :  { %171 = vst.msk [vmem:[#allocation5] sm:$0xff] %vm170_vm2, %v165_v38 }
 0x1a3   :  { %v167_v39 = vpop.f32.mrf.mxu2 }
 0x1a4   :  { %v168_v40 = vadd.f32 %v212_v36, %v167_v39 }
 0x1a6   :  { %172 = vst.msk [vmem:[#allocation5 + $0x8] sm:$0xff] %vm170_vm2, %v168_v40 }
 0x1a7   :  { %185 = dma.vmem_to_hbm [thread:$0]  %s178_s4, 256, %s180_s26, [#allocation4], %s266_s29, %s266_s29, %s267_s30  }
 0x1a8   :  { %263 = dma.done.wait [#allocation4], 256  }
 0x1a9   :  { %264 = vsyncadd [#allocation4], 4294967040 }
 0x1aa   :  { %190 = vsyncpa [#allocation3], 1 }
 0x1ab   :  { %191 = vsyncpa [#allocation4], 1 }

</bundles_post_ra>
